<compile_context>
chip_gen: v7x
topology: tpu7x:2x2x1
jax: 0.10.0
libtpu: 0.0.40
codegen_flags: <defaults>
</compile_context>

<pallas_src>
import functools

import jax
import jax.numpy as jnp
import numpy as np
from jax.experimental import pallas as pl
from jax.experimental.pallas import tpu as pltpu

# Pin f32 matmul precision so the Pallas kernel and the plain-JAX reference agree.
jax.config.update("jax_default_matmul_precision", "highest")


# ----------------------------- Pallas kernel ------------------------------- #
def itbf_kernel(wemb_ref, img_ref,
                w_te_ref, w_img_ref, b_img_ref,
                w_t_ref, w_v_ref, w_zc_ref, b_c_ref,
                out_ref):
    TBS, DW = wemb_ref.shape
    TB, CIN, R = img_ref.shape
    S = TBS // TB
    DIMV = w_img_ref.shape[1]

    # ---- text encoder: per-token linear + tanh, summed over the sequence.
    # wemb arrives pre-flattened (TB*S, DW) so this is a plain 2-D MXU matmul.
    te = jnp.tanh(jnp.dot(wemb_ref[...], w_te_ref[...],
                          preferred_element_type=jnp.float32))             # (TB*S, DT)
    t = te.reshape(TB, S, te.shape[-1]).sum(axis=1)                        # (TB, DT)

    # ---- img_enc: 1x1 conv over channels + ReLU, channel-major so the R regions stay
    # on the lane axis.  K = CIN (=4) is too shallow for the MXU, so it is unrolled as
    # CIN VPU broadcast multiply-adds; w_img/b_img are pre-shaped in the wrapper so no
    # in-kernel relayout is needed.
    img = img_ref[...]                                                     # (TB, CIN, R)
    v_pre = b_img_ref[...]                                                 # (1, DIMV, 1)
    for c in range(CIN):                                                   # static unroll
        v_pre = v_pre + img[:, c, :][:, None, :] * w_img_ref[c]            # (TB, DIMV, R)
    v = jnp.maximum(v_pre, 0.0)

    # ---- Fusion + values.sum(1), with the region sum hoisted ahead of w_v / w_zc:
    #   sum_r (ht * (v_r @ w_v)) @ w_z @ w_c == (ht * ((sum_r v_r) @ w_v)) @ (w_z @ w_c)
    # (valid because the approximated fusion is bilinear-then-linear and ReLU is applied
    #  before the region sum; w_z @ w_c folded in the wrapper: no nonlinearity between.)
    v_sum = jnp.sum(v, axis=2)                                             # (TB, DIMV)
    ht = jnp.dot(t, w_t_ref[...], preferred_element_type=jnp.float32)      # (TB, MM)
    hv = jnp.dot(v_sum, w_v_ref[...], preferred_element_type=jnp.float32)  # (TB, MM)
    logits = jnp.dot(ht * hv, w_zc_ref[...],
                     preferred_element_type=jnp.float32) + b_c_ref[...]    # (TB, NCP)
    out_ref[...] = logits                                                  # lane-dense store


# ------------------------------ tiling logic -------------------------------- #
def _tpu_info():
    """Best-effort query of per-core VMEM capacity and TensorCore count."""
    vmem_cap = None
    num_cores = 1
    try:
        info = pltpu.get_tpu_info()
        vmem_cap = int(getattr(info, "vmem_capacity_bytes", 0)) or None
        for attr in ("num_cores", "tensorcore_count", "num_tensorcores", "cores_per_chip"):
            val = getattr(info, attr, None)
            if val:
                num_cores = int(val)
                break
    except Exception:
        pass  # interpret mode / older jax: fall back to conservative values
    if vmem_cap is None:
        vmem_cap = 64 << 20          # conservative: v7x per-TC VMEM
    return {
        "num_cores": num_cores,
        # tile budget ~1/4 of physical VMEM (keeps double-buffered tiles well clear of
        # the scoped limit on v5e/v6e and of v7x's smaller 64 MiB VMEM)
        "tile_budget": max(8 << 20, vmem_cap // 4),
        "vmem_limit": int(min(vmem_cap // 2, 96 << 20)),
    }


def _pick_tb(batch, seq, per_example_bytes, num_cores, tile_budget):
    """Batch-tile size: single grid step on 1-TC parts whenever it fits the VMEM budget;
    on dual-TC parts split only when each step still carries substantial (>=256-row) work."""
    max_tb = max(1, tile_budget // max(per_example_bytes, 1))
    # Legal tiles: the full batch (grid == 1) or sublane-aligned partial tiles.
    cand = [d for d in range(1, batch + 1)
            if batch % d == 0 and (d == batch or (d % 8 == 0 and (d * seq) % 8 == 0))]
    fitting = [d for d in cand if d <= max_tb]
    tb = max(fitting) if fitting else min(cand)
    if num_cores >= 2:
        multi = [d for d in fitting if batch // d >= 2 and d >= 256]
        if multi:
            tb = max(multi)
    return tb


# ------------------------------- weight prep -------------------------------- #
def prepare_weights(params):
    """One-time prep: fold w_z into the classifier, pad outputs to 128 lanes, pre-shape
    the 1x1-conv weights for implicit lane/sublane broadcast inside the kernel."""
    w_zc = jnp.dot(params["w_z"], params["w_c"],
                   preferred_element_type=jnp.float32)                     # (MM, NC) exact
    nc = w_zc.shape[1]
    ncp = ((nc + 127) // 128) * 128
    return {
        "w_te": params["w_te"],                                            # (DW, DT)
        "w_img": params["w_img"][:, :, None],                              # (CIN, DIMV, 1)
        "b_img": params["b_img"][:, :, None],                              # (1, DIMV, 1)
        "w_t": params["w_t"],                                              # (DT, MM)
        "w_v": params["w_v"],                                              # (DIMV, MM)
        "w_zc": jnp.pad(w_zc, ((0, 0), (0, ncp - nc))),                    # (MM, NCP)
        "b_c": jnp.pad(params["b_c"], ((0, 0), (0, ncp - nc))),            # (1, NCP)
    }


# ------------------------------- pallas wrapper ------------------------------ #
def _itbf_pallas(wemb, img_cr, prep):
    B, S, DW = wemb.shape
    _, CIN, R = img_cr.shape
    DT = prep["w_te"].shape[1]
    DIMV = prep["w_img"].shape[1]
    NCP = prep["w_zc"].shape[1]

    # Per-example f32 VMEM footprint: double-buffered in/out tiles + dominant intermediates.
    per_ex = 4 * (2 * S * DW + 2 * CIN * R + 2 * NCP      # pipelined input/output tiles
                  + S * DT + DIMV * R)                    # te, v_pre intermediates
    info = _tpu_info()
    tb = _pick_tb(B, S, per_ex, info["num_cores"], info["tile_budget"])
    grid = (B // tb,)

    wemb_flat = wemb.reshape(B * S, DW)
    weights = [prep["w_te"], prep["w_img"], prep["b_img"],
               prep["w_t"], prep["w_v"], prep["w_zc"], prep["b_c"]]

    def full_spec(arr):
        nd = arr.ndim
        return pl.BlockSpec(arr.shape, lambda b, _nd=nd: (0,) * _nd)

    return pl.pallas_call(
        itbf_kernel,
        out_shape=jax.ShapeDtypeStruct((B, NCP), jnp.float32),
        grid=grid,
        in_specs=[pl.BlockSpec((tb * S, DW), lambda b: (b, 0)),
                  pl.BlockSpec((tb, CIN, R), lambda b: (b, 0, 0))]
                 + [full_spec(w) for w in weights],
        out_specs=pl.BlockSpec((tb, NCP), lambda b: (b, 0)),
        compiler_params=pltpu.CompilerParams(
            dimension_semantics=("parallel",),
            vmem_limit_bytes=info["vmem_limit"]),
    )(wemb_flat, img_cr, *weights)


@functools.partial(jax.jit, static_argnames=("n_classes",))
def itbf_forward(wemb, img_cr, prep, *, n_classes):
    """wemb: (B, S, dim_w) f32; img_cr: (B, c_in, R) f32 -> logits (B, n_classes)."""
    return _itbf_pallas(wemb, img_cr, prep)[:, :n_classes]


# --------------------------- plain-JAX reference ---------------------------- #
def itbf_reference(wemb, img_cr, params):
    te = jnp.tanh(jnp.einsum("bsw,wt->bst", wemb, params["w_te"]))
    t = te.sum(axis=1)                                                     # (B, dim_t)
    vraw = jnp.transpose(img_cr, (0, 2, 1))                                # (B, R, c_in)
    v = jnp.maximum(jnp.einsum("brc,cd->brd", vraw, params["w_img"])
                    + params["b_img"], 0.0)                                # (B, R, dim_v)
    ht = t @ params["w_t"]                                                 # (B, mm)
    hv = jnp.einsum("brd,dm->brm", v, params["w_v"])                       # (B, R, mm)
    vals = jnp.einsum("brm,mz->brz", ht[:, None, :] * hv, params["w_z"])   # (B, R, dz)
    z = vals.sum(axis=1)                                                   # (B, dz)
    return z @ params["w_c"] + params["b_c"]                               # (B, NC)


# --------------------------------- main -------------------------------------- #
if __name__ == "__main__":
    # sizes
    B, C_IN, H, W = 2, 4, 16, 16          # batch['img']: NCHW
    SEQ, VOCAB = 8, 100                   # batch['caption']: token ids
    DIM_W, DIM_T, DIM_V = 32, 32, 16
    MM_DIM, DIM_Z, N_CLASSES = 64, 32, 16
    R = H * W                             # n_regions

    # deterministic parameters
    pk = jax.random.PRNGKey(42)
    ks = jax.random.split(pk, 9)
    params = {
        "emb_table": 0.1 * jax.random.normal(ks[0], (VOCAB, DIM_W), jnp.float32),
        "w_te":  0.1 * jax.random.normal(ks[1], (DIM_W, DIM_T), jnp.float32),
        "w_img": 0.1 * jax.random.normal(ks[2], (C_IN, DIM_V), jnp.float32),
        "b_img": 0.01 * jax.random.normal(ks[3], (1, DIM_V), jnp.float32),
        "w_t":   0.1 * jax.random.normal(ks[4], (DIM_T, MM_DIM), jnp.float32),
        "w_v":   0.1 * jax.random.normal(ks[5], (DIM_V, MM_DIM), jnp.float32),
        "w_z":   0.1 * jax.random.normal(ks[6], (MM_DIM, DIM_Z), jnp.float32),
        "w_c":   0.1 * jax.random.normal(ks[7], (DIM_Z, N_CLASSES), jnp.float32),
        "b_c":   0.01 * jax.random.normal(ks[8], (1, N_CLASSES), jnp.float32),
    }

    # deterministic example inputs (batch dict of the PyTorch module)
    ik = jax.random.PRNGKey(0)
    k_img, k_cap = jax.random.split(ik)
    img = jax.random.normal(k_img, (B, C_IN, H, W), jnp.float32)           # NCHW
    caption = jax.random.randint(k_cap, (B, SEQ), 0, VOCAB, jnp.int32)

    # glue (plain JAX):
    # TODO(synk): nn.Embedding gather kept in plain JAX; a Pallas version needs manual DMA gather.
    wemb = jnp.take(params["emb_table"], caption, axis=0)                  # (B, S, dim_w)
    # TODO(synk): the real t_emb/img_enc/fusion/classif are opaque injected modules; approximated
    # here as per-token linear+tanh, 1x1-conv+ReLU, MLB-style bilinear fusion and a linear head.
    # Image kept in channel-major (B, C_IN, H*W) layout -> regions live on the lane axis.
    img_cr = img.reshape(B, C_IN, R)                                       # (B, c_in, R)

    prep = prepare_weights(params)                                         # one-time weight prep

    logits = jax.block_until_ready(itbf_forward(wemb, img_cr, prep, n_classes=N_CLASSES))
    ref = jax.block_until_ready(itbf_reference(wemb, img_cr, params))

    assert logits.shape == (B, N_CLASSES)
    np.testing.assert_allclose(np.asarray(logits), np.asarray(ref), rtol=2e-3, atol=2e-3)
    print("KERNEL_OK")
</pallas_src>

<mosaic_0001>
module attributes {stable_mosaic.version = 11 : i64} {
  func.func @itbf_kernel(%arg0: i32, %arg1: memref<16x32xf32, #tpu.memory_space<vmem>>, %arg2: memref<2x4x256xf32, #tpu.memory_space<vmem>>, %arg3: memref<32x32xf32, #tpu.memory_space<vmem>>, %arg4: memref<4x16x1xf32, #tpu.memory_space<vmem>>, %arg5: memref<1x16x1xf32, #tpu.memory_space<vmem>>, %arg6: memref<32x64xf32, #tpu.memory_space<vmem>>, %arg7: memref<16x64xf32, #tpu.memory_space<vmem>>, %arg8: memref<64x128xf32, #tpu.memory_space<vmem>>, %arg9: memref<1x128xf32, #tpu.memory_space<vmem>>, %arg10: memref<2x128xf32, #tpu.memory_space<vmem>>) attributes {dimension_semantics = [#tpu.dimension_semantics<parallel>], iteration_bounds = array<i64: 1>, scalar_prefetch = 0 : i64, scratch_operands = 0 : i64, tpu.core_type = #tpu.core_type<tc>, window_params = [{transform_indices = @transform_0, window_bounds = array<i64: 16, 32>}, {transform_indices = @transform_1, window_bounds = array<i64: 2, 4, 256>}, {pipeline_mode = #tpu.pipeline_mode<synchronous>, transform_indices = @transform_2, window_bounds = array<i64: 32, 32>}, {pipeline_mode = #tpu.pipeline_mode<synchronous>, transform_indices = @transform_3, window_bounds = array<i64: 4, 16, 1>}, {pipeline_mode = #tpu.pipeline_mode<synchronous>, transform_indices = @transform_4, window_bounds = array<i64: 1, 16, 1>}, {pipeline_mode = #tpu.pipeline_mode<synchronous>, transform_indices = @transform_5, window_bounds = array<i64: 32, 64>}, {pipeline_mode = #tpu.pipeline_mode<synchronous>, transform_indices = @transform_6, window_bounds = array<i64: 16, 64>}, {pipeline_mode = #tpu.pipeline_mode<synchronous>, transform_indices = @transform_7, window_bounds = array<i64: 64, 128>}, {pipeline_mode = #tpu.pipeline_mode<synchronous>, transform_indices = @transform_8, window_bounds = array<i64: 1, 128>}, {transform_indices = @transform_9, window_bounds = array<i64: 2, 128>}]} {
    %c0 = arith.constant 0 : index
    %c0_0 = arith.constant 0 : index
    %0 = vector.load %arg1[%c0, %c0_0] : memref<16x32xf32, #tpu.memory_space<vmem>>, vector<16x32xf32>
    %c0_1 = arith.constant 0 : index
    %c0_2 = arith.constant 0 : index
    %1 = vector.load %arg3[%c0_1, %c0_2] : memref<32x32xf32, #tpu.memory_space<vmem>>, vector<32x32xf32>
    %cst = arith.constant dense<0.000000e+00> : vector<16x32xf32>
    %2 = tpu.matmul %0, %1, %cst {dimension_numbers = #tpu.dot_dimension_numbers<[1], [0], [0], [1], [0, 0, 1, 1], [], []>, precision = #tpu.contract_precision<fp32>} : vector<16x32xf32>, vector<32x32xf32>, vector<16x32xf32> -> vector<16x32xf32>
    %3 = math.tanh %2 : vector<16x32xf32>
    %4 = vector.shape_cast %3 : vector<16x32xf32> to vector<2x8x32xf32>
    %cst_3 = arith.constant dense<0.000000e+00> : vector<2x32xf32>
    %5 = vector.multi_reduction <add>, %4, %cst_3 [1] : vector<2x8x32xf32> to vector<2x32xf32>
    %c0_4 = arith.constant 0 : index
    %c0_5 = arith.constant 0 : index
    %c0_6 = arith.constant 0 : index
    %6 = vector.load %arg2[%c0_4, %c0_5, %c0_6] : memref<2x4x256xf32, #tpu.memory_space<vmem>>, vector<2x4x256xf32>
    %c0_7 = arith.constant 0 : index
    %c0_8 = arith.constant 0 : index
    %c0_9 = arith.constant 0 : index
    %7 = vector.load %arg5[%c0_7, %c0_8, %c0_9] : memref<1x16x1xf32, #tpu.memory_space<vmem>>, vector<1x16x1xf32>
    %8 = vector.extract_strided_slice %6 {offsets = [0, 0, 0], sizes = [2, 1, 256], strides = [1, 1, 1]} : vector<2x4x256xf32> to vector<2x1x256xf32>
    %9 = vector.shape_cast %8 : vector<2x1x256xf32> to vector<2x256xf32>
    %10 = vector.shape_cast %9 : vector<2x256xf32> to vector<2x1x256xf32>
    %c0_10 = arith.constant 0 : index
    %c0_11 = arith.constant 0 : index
    %c0_12 = arith.constant 0 : index
    %11 = vector.load %arg4[%c0_10, %c0_11, %c0_12] : memref<4x16x1xf32, #tpu.memory_space<vmem>>, vector<1x16x1xf32>
    %12 = vector.shape_cast %11 : vector<1x16x1xf32> to vector<16x1xf32>
    %13 = vector.shape_cast %12 : vector<16x1xf32> to vector<1x16x1xf32>
    %14 = vector.broadcast %10 : vector<2x1x256xf32> to vector<2x16x256xf32>
    %15 = vector.broadcast %13 : vector<1x16x1xf32> to vector<2x16x256xf32>
    %16 = arith.mulf %14, %15 : vector<2x16x256xf32>
    %17 = vector.broadcast %7 : vector<1x16x1xf32> to vector<2x16x256xf32>
    %18 = arith.addf %17, %16 : vector<2x16x256xf32>
    %19 = vector.extract_strided_slice %6 {offsets = [0, 1, 0], sizes = [2, 1, 256], strides = [1, 1, 1]} : vector<2x4x256xf32> to vector<2x1x256xf32>
    %20 = vector.shape_cast %19 : vector<2x1x256xf32> to vector<2x256xf32>
    %21 = vector.shape_cast %20 : vector<2x256xf32> to vector<2x1x256xf32>
    %c1 = arith.constant 1 : index
    %c0_13 = arith.constant 0 : index
    %c0_14 = arith.constant 0 : index
    %22 = vector.load %arg4[%c1, %c0_13, %c0_14] : memref<4x16x1xf32, #tpu.memory_space<vmem>>, vector<1x16x1xf32>
    %23 = vector.shape_cast %22 : vector<1x16x1xf32> to vector<16x1xf32>
    %24 = vector.shape_cast %23 : vector<16x1xf32> to vector<1x16x1xf32>
    %25 = vector.broadcast %21 : vector<2x1x256xf32> to vector<2x16x256xf32>
    %26 = vector.broadcast %24 : vector<1x16x1xf32> to vector<2x16x256xf32>
    %27 = arith.mulf %25, %26 : vector<2x16x256xf32>
    %28 = arith.addf %18, %27 : vector<2x16x256xf32>
    %29 = vector.extract_strided_slice %6 {offsets = [0, 2, 0], sizes = [2, 1, 256], strides = [1, 1, 1]} : vector<2x4x256xf32> to vector<2x1x256xf32>
    %30 = vector.shape_cast %29 : vector<2x1x256xf32> to vector<2x256xf32>
    %31 = vector.shape_cast %30 : vector<2x256xf32> to vector<2x1x256xf32>
    %c2 = arith.constant 2 : index
    %c0_15 = arith.constant 0 : index
    %c0_16 = arith.constant 0 : index
    %32 = vector.load %arg4[%c2, %c0_15, %c0_16] : memref<4x16x1xf32, #tpu.memory_space<vmem>>, vector<1x16x1xf32>
    %33 = vector.shape_cast %32 : vector<1x16x1xf32> to vector<16x1xf32>
    %34 = vector.shape_cast %33 : vector<16x1xf32> to vector<1x16x1xf32>
    %35 = vector.broadcast %31 : vector<2x1x256xf32> to vector<2x16x256xf32>
    %36 = vector.broadcast %34 : vector<1x16x1xf32> to vector<2x16x256xf32>
    %37 = arith.mulf %35, %36 : vector<2x16x256xf32>
    %38 = arith.addf %28, %37 : vector<2x16x256xf32>
    %39 = vector.extract_strided_slice %6 {offsets = [0, 3, 0], sizes = [2, 1, 256], strides = [1, 1, 1]} : vector<2x4x256xf32> to vector<2x1x256xf32>
    %40 = vector.shape_cast %39 : vector<2x1x256xf32> to vector<2x256xf32>
    %41 = vector.shape_cast %40 : vector<2x256xf32> to vector<2x1x256xf32>
    %c3 = arith.constant 3 : index
    %c0_17 = arith.constant 0 : index
    %c0_18 = arith.constant 0 : index
    %42 = vector.load %arg4[%c3, %c0_17, %c0_18] : memref<4x16x1xf32, #tpu.memory_space<vmem>>, vector<1x16x1xf32>
    %43 = vector.shape_cast %42 : vector<1x16x1xf32> to vector<16x1xf32>
    %44 = vector.shape_cast %43 : vector<16x1xf32> to vector<1x16x1xf32>
    %45 = vector.broadcast %41 : vector<2x1x256xf32> to vector<2x16x256xf32>
    %46 = vector.broadcast %44 : vector<1x16x1xf32> to vector<2x16x256xf32>
    %47 = arith.mulf %45, %46 : vector<2x16x256xf32>
    %48 = arith.addf %38, %47 : vector<2x16x256xf32>
    %cst_19 = arith.constant 0.000000e+00 : f32
    %49 = vector.broadcast %cst_19 : f32 to vector<2x16x256xf32>
    %50 = arith.maximumf %48, %49 : vector<2x16x256xf32>
    %cst_20 = arith.constant dense<0.000000e+00> : vector<2x16xf32>
    %51 = vector.multi_reduction <add>, %50, %cst_20 [2] : vector<2x16x256xf32> to vector<2x16xf32>
    %c0_21 = arith.constant 0 : index
    %c0_22 = arith.constant 0 : index
    %52 = vector.load %arg6[%c0_21, %c0_22] : memref<32x64xf32, #tpu.memory_space<vmem>>, vector<32x64xf32>
    %cst_23 = arith.constant dense<0.000000e+00> : vector<2x64xf32>
    %53 = tpu.matmul %5, %52, %cst_23 {dimension_numbers = #tpu.dot_dimension_numbers<[1], [0], [0], [1], [0, 0, 1, 1], [], []>, precision = #tpu.contract_precision<fp32>} : vector<2x32xf32>, vector<32x64xf32>, vector<2x64xf32> -> vector<2x64xf32>
    %c0_24 = arith.constant 0 : index
    %c0_25 = arith.constant 0 : index
    %54 = vector.load %arg7[%c0_24, %c0_25] : memref<16x64xf32, #tpu.memory_space<vmem>>, vector<16x64xf32>
    %cst_26 = arith.constant dense<0.000000e+00> : vector<2x64xf32>
    %55 = tpu.matmul %51, %54, %cst_26 {dimension_numbers = #tpu.dot_dimension_numbers<[1], [0], [0], [1], [0, 0, 1, 1], [], []>, precision = #tpu.contract_precision<fp32>} : vector<2x16xf32>, vector<16x64xf32>, vector<2x64xf32> -> vector<2x64xf32>
    %56 = arith.mulf %53, %55 : vector<2x64xf32>
    %c0_27 = arith.constant 0 : index
    %c0_28 = arith.constant 0 : index
    %57 = vector.load %arg8[%c0_27, %c0_28] : memref<64x128xf32, #tpu.memory_space<vmem>>, vector<64x128xf32>
    %cst_29 = arith.constant dense<0.000000e+00> : vector<2x128xf32>
    %58 = tpu.matmul %56, %57, %cst_29 {dimension_numbers = #tpu.dot_dimension_numbers<[1], [0], [0], [1], [0, 0, 1, 1], [], []>, precision = #tpu.contract_precision<fp32>} : vector<2x64xf32>, vector<64x128xf32>, vector<2x128xf32> -> vector<2x128xf32>
    %c0_30 = arith.constant 0 : index
    %c0_31 = arith.constant 0 : index
    %59 = vector.load %arg9[%c0_30, %c0_31] : memref<1x128xf32, #tpu.memory_space<vmem>>, vector<1x128xf32>
    %60 = vector.broadcast %59 : vector<1x128xf32> to vector<2x128xf32>
    %61 = arith.addf %58, %60 : vector<2x128xf32>
    %c0_32 = arith.constant 0 : index
    %c0_33 = arith.constant 0 : index
    %62 = vector.load %arg10[%c0_32, %c0_33] : memref<2x128xf32, #tpu.memory_space<vmem>>, vector<2x128xf32>
    tpu.vector_store %arg10[%c0_32, %c0_33], %61 {strides = array<i32>} : memref<2x128xf32, #tpu.memory_space<vmem>>, vector<2x128xf32>,
    return
  }
  func.func @transform_0(%arg0: i32) -> (i32, i32) {
    %c0_i32 = arith.constant 0 : i32
    %c0_i32_0 = arith.constant 0 : i32
    return %arg0, %c0_i32 : i32, i32
  }
  func.func @transform_1(%arg0: i32) -> (i32, i32, i32) {
    %c0_i32 = arith.constant 0 : i32
    %c0_i32_0 = arith.constant 0 : i32
    %c0_i32_1 = arith.constant 0 : i32
    return %arg0, %c0_i32, %c0_i32_0 : i32, i32, i32
  }
  func.func @transform_2(%arg0: i32) -> (i32, i32) {
    %c0_i32 = arith.constant 0 : i32
    %c0_i32_0 = arith.constant 0 : i32
    %c0_i32_1 = arith.constant 0 : i32
    return %c0_i32, %c0_i32_0 : i32, i32
  }
  func.func @transform_3(%arg0: i32) -> (i32, i32, i32) {
    %c0_i32 = arith.constant 0 : i32
    %c0_i32_0 = arith.constant 0 : i32
    %c0_i32_1 = arith.constant 0 : i32
    %c0_i32_2 = arith.constant 0 : i32
    return %c0_i32, %c0_i32_0, %c0_i32_1 : i32, i32, i32
  }
  func.func @transform_4(%arg0: i32) -> (i32, i32, i32) {
    %c0_i32 = arith.constant 0 : i32
    %c0_i32_0 = arith.constant 0 : i32
    %c0_i32_1 = arith.constant 0 : i32
    %c0_i32_2 = arith.constant 0 : i32
    return %c0_i32, %c0_i32_0, %c0_i32_1 : i32, i32, i32
  }
  func.func @transform_5(%arg0: i32) -> (i32, i32) {
    %c0_i32 = arith.constant 0 : i32
    %c0_i32_0 = arith.constant 0 : i32
    %c0_i32_1 = arith.constant 0 : i32
    return %c0_i32, %c0_i32_0 : i32, i32
  }
  func.func @transform_6(%arg0: i32) -> (i32, i32) {
    %c0_i32 = arith.constant 0 : i32
    %c0_i32_0 = arith.constant 0 : i32
    %c0_i32_1 = arith.constant 0 : i32
    return %c0_i32, %c0_i32_0 : i32, i32
  }
  func.func @transform_7(%arg0: i32) -> (i32, i32) {
    %c0_i32 = arith.constant 0 : i32
    %c0_i32_0 = arith.constant 0 : i32
    %c0_i32_1 = arith.constant 0 : i32
    return %c0_i32, %c0_i32_0 : i32, i32
  }
  func.func @transform_8(%arg0: i32) -> (i32, i32) {
    %c0_i32 = arith.constant 0 : i32
    %c0_i32_0 = arith.constant 0 : i32
    %c0_i32_1 = arith.constant 0 : i32
    return %c0_i32, %c0_i32_0 : i32, i32
  }
  func.func @transform_9(%arg0: i32) -> (i32, i32) {
    %c0_i32 = arith.constant 0 : i32
    %c0_i32_0 = arith.constant 0 : i32
    return %arg0, %c0_i32 : i32, i32
  }
}

</mosaic_0001>

<bundles_post_ra>
// kernel: itbf_forward.1
= control target key start
LH: loop header
LB: loop body
LE: loop exit
PB: predicated region body
PF: predicated region fallthrough
CT: control target
= control target key end

     0   :  { %14 = vsyncpa [#allocation3], 0  ;;  %s3702_s0 = inlined_call_operand.vmem [shape: f32[16,32], index: 0, kind: input, shape index: {}]   ;;  %s3703_s1 = inlined_call_operand.hbm [shape: f32[2,4,256], index: 1, kind: input, shape index: {}]   ;;  %s3704_s2 = inlined_call_operand.vmem [shape: f32[32,32], index: 2, kind: input, shape index: {}]   ;;  %s3705_s3 = inlined_call_operand.vmem [shape: f32[4,16,1], index: 3, kind: input, shape index: {}]   ;;  %s3706_s4 = inlined_call_operand.vmem [shape: f32[1,16,1], index: 4, kind: input, shape index: {}]   ;;  %s3707_s5 = inlined_call_operand.hbm [shape: f32[32,64], index: 5, kind: input, shape index: {}]   ;;  %s3708_s6 = inlined_call_operand.hbm [shape: f32[16,64], index: 6, kind: input, shape index: {}]   ;;  %s3709_s7 = inlined_call_operand.vmem [shape: f32[64,128], index: 7, kind: input, shape index: {}]   ;;  %s3710_s8 = inlined_call_operand.vmem [shape: f32[1,128], index: 8, kind: input, shape index: {}]   ;;  %s3711_s9 = inlined_call_operand.hbm [shape: f32[2,128], index: 9, kind: output, shape index: {}]  }
   0x1   :  { %15 = vsyncpa [#allocation6], 0 }
   0x2   :  { %16 = vsyncpa [#allocation4], 0  ;;  %s3243_s30 = smov [#allocation5]   ;;  %s3244_s11 = smov [#allocation2]  }
   0x3   :  { %s42_s10 = sshll.u32 %s3243_s30, 4  ;;  %s24_s12 = sshll.u32 %s3244_s11, 4  ;;  %s43_s10 = int_to_ptr.vmem [resolvable:$true] %s42_s10  ;;  %s3303_s12 = int_to_ptr.vmem [resolvable:$true] %s24_s12 }
   0x4   :  { %s3149_s15 = scalar_lea.hbm %s3707_s5, 512 }
   0x5   :  { %p3150_p0 = scmp.ne.s32.totalorder %s3707_s5, %s3149_s15  ;;  %p3153_p1 = scmp.lt.u32.totalorder %s3149_s15, %s3707_s5 }
   0x7   :  { %p3155_p2 = pnand %p3153_p1, %p3150_p0 }
   0x9   :  { %3158 = shalt.err (!%p3155_p2)
}
   0xa   :  { %s3159_s20 = scalar_lea.vmem %s43_s10, 512  ;;  %p3164_p4 = scmp.lt.s32.totalorder %s43_s10, %s43_s10 }
   0xb   :  { %p3160_p3 = scmp.ne.s32.totalorder %s43_s10, %s3159_s20  ;;  %p3165_p5 = scmp.lt.s32.totalorder %s3159_s20, %s3159_s20 }
   0xd   :  { %p3166_p6 = por %p3165_p5, %p3164_p4 }
   0xf   :  { %p3167_p7 = pnand %p3166_p6, %p3160_p3 }
  0x11   :  { %3170 = shalt.err (!%p3167_p7)
}
  0x12   :  { %s3245_s21 = smov 128   ;;  %s3246_s22 = smov 8  }
  0x13   :  { %48 = dma.hbm_to_vmem [thread:$0]  %s3707_s5, 512, %s43_s10, [#allocation6], %s3245_s21, %s3245_s21, %s3246_s22  }
  0x14   :  { %s3171_s27 = scalar_lea.hbm %s3703_s1, 256 }
  0x15   :  { %p3172_p8 = scmp.ne.s32.totalorder %s3703_s1, %s3171_s27  ;;  %p3175_p9 = scmp.lt.u32.totalorder %s3171_s27, %s3703_s1 }
  0x17   :  { %p3177_p10 = pnand %p3175_p9, %p3172_p8 }
  0x19   :  { %3180 = shalt.err (!%p3177_p10)
}
  0x1a   :  { %s3181_s13 = scalar_lea.vmem %s3303_s12, 256  ;;  %p3186_p12 = scmp.lt.s32.totalorder %s3303_s12, %s3303_s12 }
  0x1b   :  { %p3182_p11 = scmp.ne.s32.totalorder %s3303_s12, %s3181_s13  ;;  %p3187_p13 = scmp.lt.s32.totalorder %s3181_s13, %s3181_s13 }
  0x1d   :  { %p3188_p0 = por %p3187_p13, %p3186_p12 }
  0x1f   :  { %p3189_p1 = pnand %p3188_p0, %p3182_p11 }
  0x21   :  { %3192 = shalt.err (!%p3189_p1)
}
  0x22   :  { %30 = dma.hbm_to_vmem [thread:$0]  %s3703_s1, 256, %s3303_s12, [#allocation3], %s3245_s21, %s3245_s21, %s3246_s22  }
  0x23   :  { %s3247_s14 = smov [#allocation7]   ;;  %s3193_s18 = scalar_lea.hbm %s3708_s6, 256 }
  0x24   :  { %s54_s15 = sshll.u32 %s3247_s14, 4  ;;  %p3194_p2 = scmp.ne.s32.totalorder %s3708_s6, %s3193_s18  ;;  %s55_s15 = int_to_ptr.vmem [resolvable:$true] %s54_s15 }
  0x25   :  { %p3197_p3 = scmp.lt.u32.totalorder %s3193_s18, %s3708_s6 }
  0x27   :  { %p3199_p4 = pnand %p3197_p3, %p3194_p2 }
  0x29   :  { %3202 = shalt.err (!%p3199_p4)
}
  0x2a   :  { %s3203_s25 = scalar_lea.vmem %s55_s15, 256  ;;  %p3208_p6 = scmp.lt.s32.totalorder %s55_s15, %s55_s15 }
  0x2b   :  { %p3204_p5 = scmp.ne.s32.totalorder %s55_s15, %s3203_s25  ;;  %p3209_p7 = scmp.lt.s32.totalorder %s3203_s25, %s3203_s25 }
  0x2d   :  { %p3210_p8 = por %p3209_p7, %p3208_p6 }
  0x2f   :  { %p3211_p9 = pnand %p3210_p8, %p3204_p5 }
  0x31   :  { %3214 = shalt.err (!%p3211_p9)
}
  0x32   :  { %60 = dma.hbm_to_vmem [thread:$0]  %s3708_s6, 256, %s55_s15, [#allocation6], %s3245_s21, %s3245_s21, %s3246_s22  }
  0x33   :  { %3237 = dma.done.wait [#allocation3], 256  }
  0x34   :  { %3238 = vsyncadd [#allocation3], 4294967040 }
  0x35   :  { %3239 = dma.done.wait [#allocation6], 768  }
  0x36   :  { %3240 = vsyncadd [#allocation6], 4294966528  ;;  %v3248_v0 = vmov 0   ;;  %v635_v1 = vld [vmem:[%s3705_s3] sm:$0xff]  ;;  %v77_v4 = vld [vmem:[%s3704_s2 + $0x8] sm:$0xff]  ;;  %vm80_vm0 = vcmask 261120   ;;  %v639_v57 = vlaneseq }
  0x37   :  { %3144 = vset.pattern.permute.xlu1 %v3248_v0  ;;  %3143 = vset.pattern.permute.xlu0 %v3248_v0  ;;  %v633_v2 = vld [vmem:[%s3706_s4] sm:$0xff]  ;;  %v636_v5 = vld [vmem:[%s3705_s3 + $0x8] sm:$0xff]  ;;  %v91_v8 = vand.u32 4294901760, %v77_v4  ;;  %v78_v9 = vld [vmem:[%s3704_s2 + $0x10] sm:$0xff]  ;;  %vm3250_vm1 = vmmov 0   ;;  %vm932_vm2 = vcmask 1041409  }
  0x38   :  { %677 = vperm.xlu0 %3143, %v635_v1   ;;  %695 = vperm.xlu1 %3144, %v633_v2   ;;  %v76_v3 = vld [vmem:[%s3704_s2] sm:$0xff]  ;;  %v634_v6 = vld [vmem:[%s3706_s4 + $0x8] sm:$0xff]  ;;  %v79_v10 = vld [vmem:[%s3704_s2 + $0x18] sm:$0xff]  ;;  %v94_v11 = vand.u32 4294901760, %v78_v9  ;;  %v3449_v58 = vshrl.u32 %v639_v57, 7  ;;  %vm1438_vm3 = vcmask 130112  }
  0x39   :  { %v88_v7 = vand.u32 4294901760, %v76_v3  ;;  %v74_v12 = vld [vmem:[%s3702_s0] sm:$0xff]  ;;  %v97_v14 = vand.u32 4294901760, %v79_v10  ;;  %v75_v16 = vld [vmem:[%s3702_s0 + $0x8] sm:$0xff]  ;;  %v3393_v20 = vsub.f32 %v77_v4, %v91_v8  ;;  %v2486_v22 = vld [vmem:[%s3705_s3 + $0x10] sm:$0xff]  ;;  %vm1450_vm4 = vcmask 130048  }
  0x3a   :  { %v82_v15 = vsel %vm80_vm0, %v74_v12, 0  ;;  %v85_v19 = vsel %vm80_vm0, %v75_v16, 0  ;;  %v3395_v21 = vsub.f32 %v78_v9, %v94_v11  ;;  %v2487_v23 = vld [vmem:[%s3705_s3 + $0x18] sm:$0xff]  ;;  %v2488_v37 = vld [vmem:[%s3705_s3 + $0x20] sm:$0xff]  ;;  %v2489_v38 = vld [vmem:[%s3705_s3 + $0x28] sm:$0xff]  ;;  %v641_v59 = vsub.s32 0, %v3449_v58 }
  0x3b   :  { %v3382_v13 = vpack.c.bf16 %v91_v8, %v88_v7  ;;  %v3388_v17 = vsub.f32 %v76_v3, %v88_v7  ;;  %v3390_v18 = vand.u32 4294901760, %v82_v15  ;;  %v3404_v24 = vpack.c.bf16 %v97_v14, %v94_v11  ;;  %v2490_v50 = vld [vmem:[%s3705_s3 + $0x30] sm:$0xff]  ;;  %v2491_v52 = vld [vmem:[%s3705_s3 + $0x38] sm:$0xff]  ;;  %v631_v61 = vld [vmem:[#allocation2] sm:$0xff]  ;;  %s3252_s23 = smov [#allocation8]  }
  0x3c   :  { %682 = vperm.xlu0 %3143, %v636_v5   ;;  %700 = vperm.xlu1 %3144, %v634_v6   ;;  %v3406_v25 = vand.u32 4294901760, %v85_v19  ;;  %v199_v27 = vsub.f32 %v79_v10, %v97_v14  ;;  %v186_v29 = vand.u32 4294901760, %v3393_v20  ;;  %v193_v30 = vand.u32 4294901760, %v3395_v21  ;;  %v632_v62 = vld [vmem:[#allocation2 + $0x8] sm:$0xff]  ;;  %s2476_s24 = sshll.u32 %s3252_s23, 4  ;;  %s2477_s24 = int_to_ptr.vmem [resolvable:$true] %s2476_s24 }
  0x3d   :  { %2920 = vmatprep.subr.bf16.mxu0 %v3382_v13  ;;  %v179_v26 = vand.u32 4294901760, %v3388_v17  ;;  %v157_v28 = vsub.f32 %v82_v15, %v3390_v18  ;;  %v2935_v53 = vpack.c.bf16 %v3393_v20, %v3388_v17  ;;  %v645_v60 = vsub.s32 4, %v3449_v58  ;;  %s3215_s0 = scalar_lea.vmem %s2477_s24, 32  ;;  %p3220_p11 = scmp.lt.s32.totalorder %s2477_s24, %s2477_s24 }
  0x3e   :  { %2922 = vmatpush3.bf16.msra.mxu0 %v3382_v13  ;;  %v167_v31 = vsub.f32 %v85_v19, %v3406_v25  ;;  %v200_v33 = vand.u32 4294901760, %v199_v27  ;;  %v187_v35 = vsub.f32 %v3393_v20, %v186_v29  ;;  %v194_v36 = vsub.f32 %v3395_v21, %v193_v30  ;;  %p3216_p10 = scmp.ne.s32.totalorder %s2477_s24, %s3215_s0  ;;  %p3221_p12 = scmp.lt.s32.totalorder %s3215_s0, %s3215_s0 }
  0x3f   :  { %2924 = vmatprep.subr.bf16.mxu0 %v3404_v24  ;;  %v180_v32 = vsub.f32 %v3388_v17, %v179_v26  ;;  %v158_v34 = vand.u32 4294901760, %v157_v28  ;;  %v2939_v54 = vpack.c.bf16 %v199_v27, %v3395_v21  ;;  %v2951_v55 = vpack.c.bf16 %v186_v29, %v179_v26 }
  0x40   :  { %752 = vperm.xlu0 %3143, %v2486_v22   ;;  %757 = vperm.xlu1 %3144, %v2487_v23   ;;  %v168_v39 = vand.u32 4294901760, %v167_v31  ;;  %v201_v41 = vsub.f32 %v199_v27, %v200_v33  ;;  %v188_v43 = vand.u32 4294901760, %v187_v35  ;;  %v195_v44 = vand.u32 4294901760, %v194_v36  ;;  %p3222_p13 = por %p3221_p12, %p3220_p11 }
  0x41   :  { %v181_v40 = vand.u32 4294901760, %v180_v32  ;;  %v159_v42 = vsub.f32 %v157_v28, %v158_v34  ;;  %v2955_v56 = vpack.c.bf16 %v200_v33, %v193_v30  ;;  %v716_v63 = vsub.s32 1, %v3449_v58 }
  0x42   :  { %2926 = vmatpush3.bf16.msra.mxu0 %v3404_v24  ;;  %v169_v45 = vsub.f32 %v167_v31, %v168_v39  ;;  %v202_v46 = vand.u32 4294901760, %v201_v41  ;;  %v720_v0 = vsub.s32 5, %v3449_v58  ;;  %v642_v1 = vrot.slane %v631_v61, %v641_v59  ;;  %p3223_p0 = pnand %p3222_p13, %p3216_p10 }
  0x43   :  { %v160_v47 = vand.u32 4294901760, %v159_v42  ;;  %v2927_v48 = vpack.c.bf16 %v188_v43, %v181_v40  ;;  %v646_v2 = vrot.slane %v631_v61, %v645_v60  ;;  %v650_v3 = vrot.slane %v632_v62, %v641_v59 }
  0x44   :  { %817 = vperm.xlu0 %3143, %v2488_v37   ;;  %822 = vperm.xlu1 %3144, %v2489_v38   ;;  %v170_v49 = vand.u32 4294901760, %v169_v45  ;;  %v2931_v51 = vpack.c.bf16 %v202_v46, %v195_v44  ;;  %v654_v4 = vrot.slane %v632_v62, %v645_v60  ;;  %v781_v5 = vsub.s32 2, %v3449_v58 }
  0x45   :  { %2639 = vmatprep.mubr.f32.mxu0 %v160_v47  ;;  %2928 = vmatprep.subr.bf16.mxu0 %v2927_v48  ;;  %v785_v6 = vsub.s32 6, %v3449_v58  ;;  %v717_v7 = vrot.slane %v631_v61, %v716_v63  ;;  %v721_v8 = vrot.slane %v631_v61, %v720_v0  ;;  %v846_v9 = vsub.s32 3, %v3449_v58 }
  0x46   :  { %2640 = vmatmul.mubr.f32.vlgmr.msra.gmra.mrb[0].mxu0 %v170_v49  ;;  %v850_v10 = vsub.s32 7, %v3449_v58  ;;  %v662_v11 = vrot.slane %v642_v1, %v641_v59  ;;  %v666_v12 = vrot.slane %v646_v2, %v641_v59  ;;  %v729_v14 = vrot.slane %v632_v62, %v720_v0 }
  0x47   :  { %2930 = vmatpush3.bf16.msra.mxu0 %v2927_v48  ;;  %2650 = vmatprep.mubr.f32.mxu0 %v3390_v18  ;;  %v670_v16 = vrot.slane %v650_v3, %v641_v59  ;;  %v674_v17 = vrot.slane %v654_v4, %v641_v59  ;;  %v782_v19 = vrot.slane %v631_v61, %v781_v5  ;;  %vm1928_vm5 = vcmask 523264  }
  0x48   :  { %882 = vperm.xlu0 %3143, %v2490_v50   ;;  %887 = vperm.xlu1 %3144, %v2491_v52   ;;  %v786_v20 = vrot.slane %v631_v61, %v785_v6  ;;  %v737_v21 = vrot.slane %v717_v7, %v716_v63  ;;  %v741_v22 = vrot.slane %v721_v8, %v716_v63 }
  0x49   :  { %2932 = vmatprep.subr.bf16.mxu0 %v2931_v51  ;;  %v790_v23 = vrot.slane %v632_v62, %v781_v5  ;;  %v851_v26 = vrot.slane %v631_v61, %v850_v10  ;;  %v855_v27 = vrot.slane %v632_v62, %v846_v9  ;;  %v749_v32 = vrot.slane %v729_v14, %v716_v63 }
  0x4a   :  { %v802_v37 = vrot.slane %v782_v19, %v781_v5  ;;  %v806_v38 = vrot.slane %v786_v20, %v781_v5 }
  0x4b   :  { %2934 = vmatpush3.bf16.msra.mxu0 %v2931_v51  ;;  %v810_v41 = vrot.slane %v790_v23, %v781_v5  ;;  %v871_v44 = vrot.slane %v851_v26, %v846_v9  ;;  %v875_v45 = vrot.slane %v855_v27, %v846_v9 }
  0x4c   :  { %2936 = vmatprep.subr.bf16.mxu0 %v2935_v53 }
  0x4e   :  { %2651 = vmatmul.mubr.f32.vlgmr.msra.gmra.mrb[0].mxu0 %v3406_v25 }
  0x4f   :  { %2938 = vmatpush3.bf16.msra.mxu0 %v2935_v53  ;;  %2661 = vmatprep.mubr.f32.mxu0 %v157_v28  ;;  %v859_v28 = vrot.slane %v632_v62, %v850_v10 }
  0x50   :  { %2940 = vmatprep.subr.bf16.mxu0 %v2939_v54 }
  0x51   :  { %v879_v46 = vrot.slane %v859_v28, %v846_v9 }
  0x53   :  { %2942 = vmatpush3.bf16.msra.mxu0 %v2939_v54 }
  0x54   :  { %2944 = vmatprep.subr.bf16.mxu0 %v3382_v13 }
  0x56   :  { %2662 = vmatmul.mubr.f32.vlgmr.msra.gmra.mrb[0].mxu0 %v167_v31 }
  0x57   :  { %2946 = vmatpush3.bf16.msra.mxu0 %v3382_v13  ;;  %2672 = vmatprep.mubr.f32.mxu0 %v158_v34 }
  0x58   :  { %2948 = vmatprep.subr.bf16.mxu0 %v3404_v24 }
  0x5b   :  { %2950 = vmatpush3.bf16.msra.mxu0 %v3404_v24 }
  0x5c   :  { %2952 = vmatprep.subr.bf16.mxu0 %v2951_v55 }
  0x5e   :  { %2673 = vmatmul.mubr.f32.vlgmr.msra.gmra.mrb[0].mxu0 %v168_v39 }
  0x5f   :  { %2954 = vmatpush3.bf16.msra.mxu0 %v2951_v55  ;;  %2683 = vmatprep.mubr.f32.mxu0 %v3390_v18 }
  0x60   :  { %2956 = vmatprep.subr.bf16.mxu0 %v2955_v56 }
  0x63   :  { %2958 = vmatpush3.bf16.msra.mxu0 %v2955_v56 }
  0x64   :  { %2960 = vmatprep.subr.bf16.mxu0 %v3382_v13 }
  0x66   :  { %2684 = vmatmul.mubr.f32.vlgmr.msra.gmra.mrb[0].mxu0 %v3406_v25 }
  0x67   :  { %2962 = vmatpush3.bf16.msra.mxu0 %v3382_v13  ;;  %2694 = vmatprep.mubr.f32.mxu0 %v3390_v18  ;;  %v725_v13 = vrot.slane %v632_v62, %v716_v63 }
  0x68   :  { %2964 = vmatprep.subr.bf16.mxu0 %v3404_v24 }
  0x69   :  { %v745_v31 = vrot.slane %v725_v13, %v716_v63 }
  0x6b   :  { %2966 = vmatpush3.bf16.msra.mxu0 %v3404_v24  ;;  %v794_v24 = vrot.slane %v632_v62, %v785_v6 }
  0x6d   :  { %v814_v42 = vrot.slane %v794_v24, %v781_v5 }
  0x6e   :  { %2695 = vmatmul.mubr.f32.vlgmr.msra.gmra.mrb[0].mxu0 %v3406_v25  ;;  %v847_v25 = vrot.slane %v631_v61, %v846_v9 }
  0x70   :  { %v867_v43 = vrot.slane %v847_v25, %v846_v9 }
  0xb7   :  { %v678_v15 = vpop.permute.xlu0 %677  ;;  %v696_v18 = vpop.permute.xlu1 %695 }
  0xb8   :  { %v685_v29 = vmul.f32 %v678_v15, %v662_v11  ;;  %v686_v30 = vmul.f32 %v678_v15, %v666_v12  ;;  %v689_v33 = vmul.f32 %v678_v15, %v670_v16  ;;  %v690_v34 = vmul.f32 %v678_v15, %v674_v17 }
  0xba   :  { %v703_v47 = vadd.f32 %v696_v18, %v685_v29  ;;  %v704_v48 = vadd.f32 %v696_v18, %v686_v30  ;;  %v707_v51 = vadd.f32 %v696_v18, %v689_v33  ;;  %v708_v52 = vadd.f32 %v696_v18, %v690_v34 }
  0xbb   :  { %v683_v35 = vpop.permute.xlu0 %682  ;;  %v701_v36 = vpop.permute.xlu1 %700 }
  0xbc   :  { %v687_v39 = vmul.f32 %v683_v35, %v662_v11  ;;  %v688_v40 = vmul.f32 %v683_v35, %v666_v12  ;;  %v691_v49 = vmul.f32 %v683_v35, %v670_v16  ;;  %v692_v50 = vmul.f32 %v683_v35, %v674_v17 }
  0xbe   :  { %v705_v53 = vadd.f32 %v701_v36, %v687_v39  ;;  %v706_v54 = vadd.f32 %v701_v36, %v688_v40  ;;  %v709_v3 = vadd.f32 %v701_v36, %v691_v49  ;;  %v710_v4 = vadd.f32 %v701_v36, %v692_v50 }
  0xbf   :  { %v753_v55 = vpop.permute.xlu0 %752  ;;  %v758_v56 = vpop.permute.xlu1 %757 }
  0xc0   :  { %v760_v59 = vmul.f32 %v753_v55, %v737_v21  ;;  %v761_v60 = vmul.f32 %v753_v55, %v741_v22  ;;  %v764_v61 = vmul.f32 %v753_v55, %v745_v31  ;;  %v765_v62 = vmul.f32 %v753_v55, %v749_v32 }
  0xc1   :  { %v762_v63 = vmul.f32 %v758_v56, %v737_v21  ;;  %v763_v0 = vmul.f32 %v758_v56, %v741_v22  ;;  %v766_v1 = vmul.f32 %v758_v56, %v745_v31  ;;  %v767_v2 = vmul.f32 %v758_v56, %v749_v32 }
  0xc2   :  { %v768_v5 = vadd.f32 %v760_v59, %v703_v47  ;;  %v769_v6 = vadd.f32 %v761_v60, %v704_v48  ;;  %v772_v7 = vadd.f32 %v764_v61, %v707_v51  ;;  %v773_v8 = vadd.f32 %v765_v62, %v708_v52 }
  0xc3   :  { %v770_v9 = vadd.f32 %v762_v63, %v705_v53  ;;  %v771_v10 = vadd.f32 %v763_v0, %v706_v54  ;;  %v818_v11 = vpop.permute.xlu0 %817  ;;  %v823_v12 = vpop.permute.xlu1 %822  ;;  %v774_v17 = vadd.f32 %v766_v1, %v709_v3  ;;  %v775_v18 = vadd.f32 %v767_v2, %v710_v4  ;;  %v926_v0 = vld [vmem:[#allocation5] sm:$0xff]  ;;  %v927_v1 = vld [vmem:[#allocation5 + $0x8] sm:$0xff] }
  0xc4   :  { %v825_v13 = vmul.f32 %v818_v11, %v802_v37  ;;  %v826_v14 = vmul.f32 %v818_v11, %v806_v38  ;;  %v829_v15 = vmul.f32 %v818_v11, %v810_v41  ;;  %v830_v16 = vmul.f32 %v818_v11, %v814_v42 }
  0xc5   :  { %v827_v19 = vmul.f32 %v823_v12, %v802_v37  ;;  %v828_v20 = vmul.f32 %v823_v12, %v806_v38  ;;  %v831_v21 = vmul.f32 %v823_v12, %v810_v41  ;;  %v832_v22 = vmul.f32 %v823_v12, %v814_v42 }
  0xc6   :  { %v833_v23 = vadd.f32 %v825_v13, %v768_v5  ;;  %v834_v24 = vadd.f32 %v826_v14, %v769_v6  ;;  %v837_v28 = vadd.f32 %v829_v15, %v772_v7  ;;  %v838_v29 = vadd.f32 %v830_v16, %v773_v8  ;;  %v928_v7 = vld [vmem:[#allocation5 + $0x10] sm:$0xff]  ;;  %v929_v8 = vld [vmem:[#allocation5 + $0x18] sm:$0xff] }
  0xc7   :  { %v883_v25 = vpop.permute.xlu0 %882  ;;  %v835_v26 = vadd.f32 %v827_v19, %v770_v9  ;;  %v836_v27 = vadd.f32 %v828_v20, %v771_v10  ;;  %v888_v34 = vpop.permute.xlu1 %887  ;;  %v839_v49 = vadd.f32 %v831_v21, %v774_v17  ;;  %v840_v52 = vadd.f32 %v832_v22, %v775_v18 }
  0xc8   :  { %v890_v30 = vmul.f32 %v883_v25, %v867_v43  ;;  %v891_v31 = vmul.f32 %v883_v25, %v871_v44  ;;  %v894_v32 = vmul.f32 %v883_v25, %v875_v45  ;;  %v895_v33 = vmul.f32 %v883_v25, %v879_v46 }
  0xc9   :  { %v892_v35 = vmul.f32 %v888_v34, %v867_v43  ;;  %v893_v36 = vmul.f32 %v888_v34, %v871_v44  ;;  %v896_v39 = vmul.f32 %v888_v34, %v875_v45  ;;  %v897_v40 = vmul.f32 %v888_v34, %v879_v46 }
  0xca   :  { %v898_v37 = vadd.f32 %v890_v30, %v833_v23  ;;  %v899_v38 = vadd.f32 %v891_v31, %v834_v24  ;;  %v902_v41 = vadd.f32 %v894_v32, %v837_v28  ;;  %v903_v42 = vadd.f32 %v895_v33, %v838_v29  ;;  %v1421_v30 = vld [vmem:[#allocation7] sm:$0xff]  ;;  %v1422_v31 = vld [vmem:[#allocation7 + $0x8] sm:$0xff] }
  0xcb   :  { %v900_v47 = vadd.f32 %v892_v35, %v835_v26  ;;  %v901_v48 = vadd.f32 %v893_v36, %v836_v27  ;;  %v904_v55 = vadd.f32 %v896_v39, %v839_v49  ;;  %v905_v43 = vadd.f32 %v897_v40, %v840_v52 }
  0xcc   :  { %v906_v50 = vmax.f32 %v898_v37, 0.0  ;;  %v907_v51 = vmax.f32 %v899_v38, 0.0  ;;  %v910_v59 = vmax.f32 %v902_v41, 0.0  ;;  %v911_v60 = vmax.f32 %v903_v42, 0.0 }
  0xcd   :  { %v908_v53 = vmax.f32 %v900_v47, 0.0  ;;  %v909_v54 = vmax.f32 %v901_v48, 0.0  ;;  %v912_v46 = vmax.f32 %v904_v55, 0.0  ;;  %v913_v61 = vmax.f32 %v905_v43, 0.0 }
  0xce   :  { %v914_v56 = vadd.f32 %v907_v51, %v906_v50  ;;  %v920_v45 = vadd.f32 %v911_v60, %v910_v59  ;;  %v3249_v63 = vmov 0.0|0.0   ;;  %v937_v2 = vand.u32 4294901760, %v926_v0 }
  0xcf   :  { %v917_v44 = vadd.f32 %v909_v54, %v908_v53  ;;  %v923_v62 = vadd.f32 %v913_v61, %v912_v46  ;;  %2967 = vmatprep.subr.bf16.mxu1 %v3249_v63  ;;  %3003 = vmatprep.subr.bf16.mxu0 %v3249_v63  ;;  %v940_v3 = vand.u32 4294901760, %v927_v1  ;;  %v943_v9 = vand.u32 4294901760, %v928_v7 }
  0xd0   :  { %915 = vadd.xlane.f32.xlu0 %v914_v56  ;;  %v3463_v5 = vsub.f32 %v926_v0, %v937_v2  ;;  %v946_v10 = vand.u32 4294901760, %v929_v8  ;;  %v3251_v16 = vmov 0.0   ;;  %v1454_v32 = vand.u32 4294901760, %v1421_v30 }
  0xd1   :  { %918 = vadd.xlane.f32.xlu1 %v917_v44  ;;  %v3461_v4 = vpack.c.bf16 %v940_v3, %v937_v2  ;;  %v3465_v6 = vsub.f32 %v927_v1, %v940_v3  ;;  %v3473_v14 = vsub.f32 %v928_v7, %v943_v9  ;;  %2705 = vmatprep.mubr.msk.f32.mxu1 %vm3250_vm1, %v3251_v16  ;;  %v1457_v33 = vand.u32 4294901760, %v1422_v31 }
  0xd2   :  { %v1018_v11 = vand.u32 4294901760, %v3463_v5  ;;  %v3471_v13 = vpack.c.bf16 %v946_v10, %v943_v9  ;;  %v3475_v15 = vsub.f32 %v929_v8, %v946_v10  ;;  %2767 = vmatprep.mubr.msk.f32.mxu0 %vm3250_vm1, %v3251_v16  ;;  %v3499_v36 = vsub.f32 %v1421_v30, %v1454_v32 }
  0xd3   :  { %2969 = vmatpush3.bf16.msra.mxu1 %v3461_v4  ;;  %v1025_v12 = vand.u32 4294901760, %v3465_v6  ;;  %v1032_v20 = vand.u32 4294901760, %v3473_v14  ;;  %v2980_v29 = vpack.c.bf16 %v3465_v6, %v3463_v5  ;;  %v3497_v35 = vpack.c.bf16 %v1457_v33, %v1454_v32 }
  0xd4   :  { %921 = vadd.xlane.f32.xlu0 %v920_v45  ;;  %2970 = vmatprep.subr.bf16.mxu1 %v3249_v63  ;;  %v1019_v17 = vsub.f32 %v3463_v5, %v1018_v11  ;;  %v1039_v21 = vand.u32 4294901760, %v3475_v15  ;;  %v2983_v34 = vpack.c.bf16 %v3475_v15, %v3473_v14  ;;  %v3501_v39 = vsub.f32 %v1422_v31, %v1457_v33  ;;  %v1914_v5 = vld [vmem:[%s3709_s7 + $0x8] sm:$0xff] }
  0xd5   :  { %v1026_v18 = vsub.f32 %v3465_v6, %v1025_v12  ;;  %v1033_v23 = vsub.f32 %v3473_v14, %v1032_v20  ;;  %3005 = vmatpush3.bf16.msra.mxu0 %v3497_v35  ;;  %v1533_v40 = vand.u32 4294901760, %v3499_v36  ;;  %v3511_v49 = vpack.c.bf16 %v1025_v12, %v1018_v11  ;;  %v1915_v6 = vld [vmem:[%s3709_s7 + $0x10] sm:$0xff] }
  0xd6   :  { %v1020_v19 = vand.u32 4294901760, %v1019_v17  ;;  %v1040_v24 = vsub.f32 %v3475_v15, %v1039_v21  ;;  %v1540_v37 = vand.u32 4294901760, %v3501_v39  ;;  %3006 = vmatprep.subr.bf16.mxu0 %v3249_v63  ;;  %v3010_v50 = vpack.c.bf16 %v3501_v39, %v3499_v36  ;;  %v1916_v15 = vld [vmem:[%s3709_s7 + $0x18] sm:$0xff] }
  0xd7   :  { %2972 = vmatpush3.bf16.msra.mxu1 %v3471_v13  ;;  %v1027_v22 = vand.u32 4294901760, %v1026_v18  ;;  %v1034_v26 = vand.u32 4294901760, %v1033_v23  ;;  %v1534_v38 = vsub.f32 %v3499_v36, %v1533_v40  ;;  %v3515_v51 = vpack.c.bf16 %v1039_v21, %v1032_v20 }
  0xd8   :  { %924 = vadd.xlane.f32.xlu0 %v923_v62  ;;  %2973 = vmatprep.subr.bf16.mxu1 %v3249_v63  ;;  %v1041_v27 = vand.u32 4294901760, %v1040_v24  ;;  %v1541_v41 = vsub.f32 %v3501_v39, %v1540_v37  ;;  %v3517_v52 = vpack.c.bf16 %v1540_v37, %v1533_v40  ;;  %v1428_v7 = vand.u32 127, %v639_v57 }
  0xd9   :  { %v3489_v25 = vpack.c.bf16 %v1027_v22, %v1020_v19  ;;  %v1535_v42 = vand.u32 4294901760, %v1534_v38  ;;  %v1936_v14 = vand.u32 4294901760, %v1914_v5 }
  0xda   :  { %v3491_v28 = vpack.c.bf16 %v1041_v27, %v1034_v26  ;;  %v1542_v47 = vand.u32 4294901760, %v1541_v41  ;;  %v1433_v10 = vadd.s32 4294967288, %v1428_v7  ;;  %v1431_v20 = vsub.s32 %v1428_v7, %v3449_v58 }
  0xdc   :  { %v3509_v48 = vpack.c.bf16 %v1542_v47, %v1535_v42  ;;  %v1436_v19 = vsub.s32 %v1433_v10, %v3449_v58 }
 0x141   :  { %v2696_v53 = vpop.f32.mrb[0].mxu0 }
 0x142   :  { %3145 = vtanh.f32 %v2696_v53  ;;  %v605_v54 = vpop.f32.mrb[1].mxu0 }
 0x143   :  { %3147 = vtanh.f32 %v605_v54 }
 0x14c   :  { %v3146_v55 = vpop.eup %3145 }
 0x14d   :  { %v3148_v56 = vpop.eup %3147  ;;  %v624_v59 = vsel %vm80_vm0, %v3146_v55, 0.0 }
 0x14e   :  { %v625_v60 = vrot.slane %v624_v59, 4  ;;  %v617_v43 = vsel %vm80_vm0, %v3148_v56, 0.0 }
 0x14f   :  { %v618_v44 = vrot.slane %v617_v43, 4 }
 0x150   :  { %v626_v45 = vadd.f32 %v625_v60, %v624_v59  ;;  %v1919_v60 = vld [vmem:[%s3709_s7 + $0x30] sm:$0xff] }
 0x151   :  { %v619_v46 = vadd.f32 %v618_v44, %v617_v43  ;;  %v1920_v43 = vld [vmem:[%s3709_s7 + $0x38] sm:$0xff] }
 0x152   :  { %v627_v61 = vrot.slane %v626_v45, 2 }
 0x153   :  { %v620_v62 = vrot.slane %v619_v46, 2 }
 0x154   :  { %v628_v0 = vadd.f32 %v627_v61, %v626_v45  ;;  %v1951_v45 = vand.u32 4294901760, %v1919_v60 }
 0x155   :  { %v621_v1 = vadd.f32 %v620_v62, %v619_v46  ;;  %v1954_v46 = vand.u32 4294901760, %v1920_v43 }
 0x156   :  { %v629_v2 = vrot.slane %v628_v0, 1  ;;  %v2059_v62 = vsub.f32 %v1919_v60, %v1951_v45 }
 0x157   :  { %v622_v3 = vrot.slane %v621_v1, 1 }
 0x158   :  { %v630_v8 = vadd.f32 %v629_v2, %v628_v0  ;;  %v2066_v0 = vsub.f32 %v1920_v43, %v1954_v46 }
 0x159   :  { %v623_v9 = vadd.f32 %v622_v3, %v621_v1  ;;  %v3644_v3 = vpack.c.bf16 %v1954_v46, %v1951_v45 }
 0x15a   :  { %v3055_v1 = vpack.c.bf16 %v2066_v0, %v2059_v62 }
 0x15b   :  { %v933_v11 = vsel %vm932_vm2, %v630_v8, %v623_v9 }
 0x15c   :  { %v934_v17 = vsel %vm80_vm0, %v933_v11, 0 }
 0x15d   :  { %v916_v12 = vpop.xlane.xlu0 %915  ;;  %v3524_v18 = vand.u32 4294901760, %v934_v17 }
 0x15e   :  { %v919_v22 = vpop.xlane.xlu1 %918  ;;  %v1432_v26 = vrot.slane %v916_v12, %v1431_v20 }
 0x15f   :  { %v1006_v21 = vsub.f32 %v934_v17, %v3524_v18  ;;  %v1437_v24 = vrot.slane %v919_v22, %v1436_v19 }
 0x161   :  { %v922_v23 = vpop.xlane.xlu0 %921  ;;  %v1007_v57 = vand.u32 4294901760, %v1006_v21  ;;  %v1439_v40 = vsel %vm1438_vm3, %v1437_v24, %v1432_v26 }
 0x162   :  { %v1443_v31 = vrot.slane %v922_v23, %v1431_v20 }
 0x163   :  { %v1008_v27 = vsub.f32 %v1006_v21, %v1007_v57 }
 0x165   :  { %v925_v30 = vpop.xlane.xlu0 %924  ;;  %v1009_v33 = vand.u32 4294901760, %v1008_v27 }
 0x166   :  { %v1447_v32 = vrot.slane %v925_v30, %v1436_v19 }
 0x167   :  { %2706 = vmatmul.mubr.f32.vlgmr.msra.gmra.mrb[0].mxu1 %v1009_v33  ;;  %v2060_v33 = vand.u32 4294901760, %v2059_v62 }
 0x168   :  { %v1448_v37 = vsel %vm1438_vm3, %v1447_v32, %v1443_v31  ;;  %2975 = vmatpush3.bf16.msra.mxu1 %v3489_v25  ;;  %2716 = vmatprep.mubr.msk.f32.mxu1 %vm3250_vm1, %v3251_v16 }
 0x169   :  { %v1449_v38 = vsel %vm932_vm2, %v1448_v37, %v1439_v40  ;;  %2976 = vmatprep.subr.bf16.mxu1 %v3249_v63  ;;  %v2067_v40 = vand.u32 4294901760, %v2066_v0 }
 0x16a   :  { %v1451_v58 = vsel %vm1450_vm4, %v1449_v38, 0  ;;  %v2061_v38 = vsub.f32 %v2059_v62, %v2060_v33 }
 0x16b   :  { %v1520_v41 = vand.u32 4294901760, %v1451_v58 }
 0x16c   :  { %2978 = vmatpush3.bf16.msra.mxu1 %v3491_v28  ;;  %v1939_v28 = vand.u32 4294901760, %v1915_v6 }
 0x16d   :  { %v1521_v42 = vsub.f32 %v1451_v58, %v1520_v41  ;;  %2979 = vmatprep.subr.bf16.mxu1 %v3249_v63  ;;  %v2068_v58 = vsub.f32 %v2066_v0, %v2067_v40 }
 0x16e   :  { %v3609_v36 = vsub.f32 %v1915_v6, %v1939_v28 }
 0x16f   :  { %v1522_v47 = vand.u32 4294901760, %v1521_v42  ;;  %2717 = vmatmul.mubr.f32.vlgmr.msra.gmra.mrb[0].mxu1 %v3524_v18 }
 0x170   :  { %2981 = vmatpush3.bf16.msra.mxu1 %v2980_v29  ;;  %2727 = vmatprep.mubr.msk.f32.mxu1 %vm3250_vm1, %v3251_v16  ;;  %v1942_v29 = vand.u32 4294901760, %v1916_v15  ;;  %v2032_v17 = vand.u32 4294901760, %v3609_v36 }
 0x171   :  { %v1523_v25 = vsub.f32 %v1521_v42, %v1522_v47  ;;  %2982 = vmatprep.subr.bf16.mxu1 %v3249_v63 }
 0x172   :  { %v3635_v61 = vpack.c.bf16 %v1942_v29, %v1939_v28  ;;  %v2033_v20 = vsub.f32 %v3609_v36, %v2032_v17 }
 0x173   :  { %v1524_v53 = vand.u32 4294901760, %v1523_v25 }
 0x174   :  { %2984 = vmatpush3.bf16.msra.mxu1 %v2983_v34  ;;  %v2034_v22 = vand.u32 4294901760, %v2033_v20 }
 0x175   :  { %2768 = vmatmul.mubr.f32.vlgmr.msra.gmra.mrb[2].mxu0 %v1524_v53  ;;  %2985 = vmatprep.subr.bf16.mxu1 %v3249_v63 }
 0x176   :  { %3008 = vmatpush3.bf16.msra.mxu0 %v3509_v48  ;;  %2774 = vmatprep.mubr.msk.f32.mxu0 %vm3250_vm1, %v3251_v16  ;;  %v3613_v48 = vsub.f32 %v1916_v15, %v1942_v29 }
 0x177   :  { %3009 = vmatprep.subr.bf16.mxu0 %v3249_v63  ;;  %2728 = vmatmul.mubr.f32.vlgmr.msra.gmra.mrb[0].mxu1 %v1006_v21 }
 0x178   :  { %2987 = vmatpush3.bf16.msra.mxu1 %v3461_v4  ;;  %2738 = vmatprep.mubr.msk.f32.mxu1 %vm3250_vm1, %v3251_v16 }
 0x179   :  { %2988 = vmatprep.subr.bf16.mxu1 %v3249_v63 }
 0x17c   :  { %2990 = vmatpush3.bf16.msra.mxu1 %v3471_v13 }
 0x17d   :  { %2775 = vmatmul.mubr.f32.vlgmr.msra.gmra.mrb[2].mxu0 %v1520_v41  ;;  %2991 = vmatprep.subr.bf16.mxu1 %v3249_v63 }
 0x17e   :  { %3011 = vmatpush3.bf16.msra.mxu0 %v3010_v50  ;;  %2781 = vmatprep.mubr.msk.f32.mxu0 %vm3250_vm1, %v3251_v16  ;;  %v3049_v50 = vpack.c.bf16 %v3613_v48, %v3609_v36 }
 0x17f   :  { %3012 = vmatprep.subr.bf16.mxu0 %v3249_v63  ;;  %2739 = vmatmul.mubr.f32.vlgmr.msra.gmra.mrb[0].mxu1 %v1007_v57 }
 0x180   :  { %2993 = vmatpush3.bf16.msra.mxu1 %v3511_v49  ;;  %2749 = vmatprep.mubr.msk.f32.mxu1 %vm3250_vm1, %v3251_v16 }
 0x181   :  { %2994 = vmatprep.subr.bf16.mxu1 %v3249_v63 }
 0x184   :  { %2996 = vmatpush3.bf16.msra.mxu1 %v3515_v51  ;;  %v1917_v51 = vld [vmem:[%s3709_s7 + $0x20] sm:$0xff] }
 0x185   :  { %2782 = vmatmul.mubr.f32.vlgmr.msra.gmra.mrb[2].mxu0 %v1521_v42  ;;  %2997 = vmatprep.subr.bf16.mxu1 %v3249_v63  ;;  %v1945_v54 = vand.u32 4294901760, %v1917_v51  ;;  %v2062_v42 = vand.u32 4294901760, %v2061_v38 }
 0x186   :  { %3014 = vmatpush3.bf16.msra.mxu0 %v3497_v35  ;;  %2788 = vmatprep.mubr.msk.f32.mxu0 %vm3250_vm1, %v3251_v16 }
 0x187   :  { %3015 = vmatprep.subr.bf16.mxu0 %v3249_v63  ;;  %2750 = vmatmul.mubr.f32.vlgmr.msra.gmra.mrb[0].mxu1 %v3524_v18  ;;  %v2045_v56 = vsub.f32 %v1917_v51, %v1945_v54 }
 0x188   :  { %2999 = vmatpush3.bf16.msra.mxu1 %v3461_v4  ;;  %2760 = vmatprep.mubr.msk.f32.mxu1 %vm3250_vm1, %v3251_v16  ;;  %v1913_v4 = vld [vmem:[%s3709_s7] sm:$0xff] }
 0x189   :  { %3000 = vmatprep.subr.bf16.mxu1 %v3249_v63  ;;  %v2046_v57 = vand.u32 4294901760, %v2045_v56 }
 0x18b   :  { %v2047_v27 = vsub.f32 %v2045_v56, %v2046_v57 }
 0x18c   :  { %3002 = vmatpush3.bf16.msra.mxu1 %v3471_v13  ;;  %v1933_v13 = vand.u32 4294901760, %v1913_v4 }
 0x18d   :  { %2789 = vmatmul.mubr.f32.vlgmr.msra.gmra.mrb[2].mxu0 %v1522_v47  ;;  %3045 = vmatprep.subr.bf16.mxu1 %v3249_v63  ;;  %v2048_v31 = vand.u32 4294901760, %v2047_v27  ;;  %v2069_v47 = vand.u32 4294901760, %v2068_v58 }
 0x18e   :  { %3017 = vmatpush3.bf16.msra.mxu0 %v3517_v52  ;;  %2795 = vmatprep.mubr.msk.f32.mxu0 %vm3250_vm1, %v3251_v16  ;;  %v3605_v34 = vsub.f32 %v1913_v4, %v1933_v13  ;;  %v3611_v39 = vpack.c.bf16 %v1936_v14, %v1933_v13  ;;  %v1918_v52 = vld [vmem:[%s3709_s7 + $0x28] sm:$0xff] }
 0x18f   :  { %3018 = vmatprep.subr.bf16.mxu0 %v3249_v63  ;;  %2761 = vmatmul.mubr.f32.vlgmr.msra.gmra.mrb[0].mxu1 %v3524_v18  ;;  %v1948_v55 = vand.u32 4294901760, %v1918_v52  ;;  %v2039_v18 = vand.u32 4294901760, %v3613_v48  ;;  %v3043_v25 = vpack.c.bf16 %v2069_v47, %v2062_v42 }
 0x190   :  { %2859 = vmatprep.mubr.msk.f32.mxu1 %vm3250_vm1, %v3251_v16  ;;  %v2018_v7 = vand.u32 4294901760, %v3605_v34 }
 0x191   :  { %v2052_v59 = vsub.f32 %v1918_v52, %v1948_v55  ;;  %v3640_v2 = vpack.c.bf16 %v1948_v55, %v1945_v54  ;;  %v2040_v21 = vsub.f32 %v3613_v48, %v2039_v18  ;;  %v3073_v53 = vpack.c.bf16 %v2039_v18, %v2032_v17 }
 0x192   :  { %v2019_v9 = vsub.f32 %v3605_v34, %v2018_v7 }
 0x193   :  { %v3052_v44 = vpack.c.bf16 %v2052_v59, %v2045_v56  ;;  %v2041_v23 = vand.u32 4294901760, %v2040_v21  ;;  %v2053_v24 = vand.u32 4294901760, %v2052_v59 }
 0x194   :  { %v2020_v11 = vand.u32 4294901760, %v2019_v9 }
 0x195   :  { %2796 = vmatmul.mubr.f32.vlgmr.msra.gmra.mrb[2].mxu0 %v1520_v41  ;;  %v3037_v26 = vpack.c.bf16 %v2041_v23, %v2034_v22  ;;  %v2054_v30 = vsub.f32 %v2052_v59, %v2053_v24  ;;  %v3076_v4 = vpack.c.bf16 %v2053_v24, %v2046_v57 }
 0x196   :  { %3020 = vmatpush3.bf16.msra.mxu0 %v3497_v35  ;;  %2802 = vmatprep.mubr.msk.f32.mxu0 %vm3250_vm1, %v3251_v16  ;;  %v3607_v35 = vsub.f32 %v1914_v5, %v1936_v14  ;;  %v3079_v5 = vpack.c.bf16 %v2067_v40, %v2060_v33 }
 0x197   :  { %3021 = vmatprep.subr.bf16.mxu0 %v3249_v63  ;;  %v2055_v32 = vand.u32 4294901760, %v2054_v30 }
 0x198   :  { %v3046_v49 = vpack.c.bf16 %v3607_v35, %v3605_v34  ;;  %v2025_v8 = vand.u32 4294901760, %v3607_v35 }
 0x199   :  { %v3040_v37 = vpack.c.bf16 %v2055_v32, %v2048_v31 }
 0x19a   :  { %3047 = vmatpush3.bf16.msra.mxu1 %v3046_v49  ;;  %v2026_v10 = vsub.f32 %v3607_v35, %v2025_v8 }
 0x19b   :  { %3048 = vmatprep.subr.bf16.mxu1 %v3249_v63 }
 0x19c   :  { %v2027_v12 = vand.u32 4294901760, %v2026_v10 }
 0x19d   :  { %2803 = vmatmul.mubr.f32.vlgmr.msra.gmra.mrb[2].mxu0 %v1520_v41  ;;  %v3070_v41 = vpack.c.bf16 %v2025_v8, %v2018_v7 }
 0x19e   :  { %2821 = vmatprep.mubr.msk.f32.mxu0 %vm3250_vm1, %v3251_v16  ;;  %3023 = vmatpush3.bf16.msra.mxu0 %v3611_v39  ;;  %v3034_v19 = vpack.c.bf16 %v2027_v12, %v2020_v11 }
 0x19f   :  { %3024 = vmatprep.subr.bf16.mxu0 %v3249_v63  ;;  %3050 = vmatpush3.bf16.msra.mxu1 %v3049_v50 }
 0x1a0   :  { %3051 = vmatprep.subr.bf16.mxu1 %v3249_v63 }
 0x1a2   :  { %3026 = vmatpush3.bf16.msra.mxu0 %v3635_v61 }
 0x1a3   :  { %3053 = vmatpush3.bf16.msra.mxu1 %v3052_v44  ;;  %3027 = vmatprep.subr.bf16.mxu0 %v3249_v63 }
 0x1a4   :  { %3054 = vmatprep.subr.bf16.mxu1 %v3249_v63 }
 0x1a6   :  { %3029 = vmatpush3.bf16.msra.mxu0 %v3640_v2 }
 0x1a7   :  { %3056 = vmatpush3.bf16.msra.mxu1 %v3055_v1  ;;  %3030 = vmatprep.subr.bf16.mxu0 %v3249_v63 }
 0x1a8   :  { %3057 = vmatprep.subr.bf16.mxu1 %v3249_v63 }
 0x1aa   :  { %3032 = vmatpush3.bf16.msra.mxu0 %v3644_v3 }
 0x1ab   :  { %3033 = vmatprep.subr.bf16.mxu0 %v3249_v63 }
 0x262   :  { %v1417_v6 = vpop.f32.mrb[0].mxu1 }
 0x263   :  { %v2762_v13 = vpop.f32.mrb[1].mxu1 }
 0x270   :  { %v1908_v14 = vpop.f32.mrb[2].mxu0 }
 0x271   :  { %v1912_v15 = vmul.f32 %v1908_v14, %v1417_v6  ;;  %v2804_v28 = vpop.f32.mrb[3].mxu0 }
 0x273   :  { %v1930_v29 = vsel %vm1928_vm5, %v1912_v15, 0 }
 0x274   :  { %v2005_v34 = vand.u32 4294901760, %v1930_v29 }
 0x276   :  { %v2006_v35 = vsub.f32 %v1930_v29, %v2005_v34 }
 0x278   :  { %v2007_v36 = vand.u32 4294901760, %v2006_v35  ;;  %2860 = vmatmul.mubr.f32.vlgmr.msra.gmra.mrb[2].mxu1 %v2006_v35 }
 0x279   :  { %3059 = vmatpush3.bf16.msra.mxu1 %v3611_v39  ;;  %2878 = vmatprep.mubr.msk.f32.mxu1 %vm3250_vm1, %v3251_v16 }
 0x27a   :  { %3060 = vmatprep.subr.bf16.mxu1 %v3249_v63  ;;  %v2008_v48 = vsub.f32 %v2006_v35, %v2007_v36 }
 0x27c   :  { %v2009_v49 = vand.u32 4294901760, %v2008_v48 }
 0x27d   :  { %3062 = vmatpush3.bf16.msra.mxu1 %v3635_v61 }
 0x27e   :  { %2822 = vmatmul.mubr.f32.vlgmr.msra.gmra.mrb[4].mxu0 %v2009_v49  ;;  %3063 = vmatprep.subr.bf16.mxu1 %v3249_v63 }
 0x27f   :  { %3035 = vmatpush3.bf16.msra.mxu0 %v3034_v19  ;;  %2840 = vmatprep.mubr.msk.f32.mxu0 %vm3250_vm1, %v3251_v16 }
 0x280   :  { %3036 = vmatprep.subr.bf16.mxu0 %v3249_v63 }
 0x281   :  { %3065 = vmatpush3.bf16.msra.mxu1 %v3640_v2 }
 0x282   :  { %3066 = vmatprep.subr.bf16.mxu1 %v3249_v63 }
 0x283   :  { %3038 = vmatpush3.bf16.msra.mxu0 %v3037_v26 }
 0x284   :  { %3039 = vmatprep.subr.bf16.mxu0 %v3249_v63 }
 0x285   :  { %3068 = vmatpush3.bf16.msra.mxu1 %v3644_v3 }
 0x286   :  { %3069 = vmatprep.subr.bf16.mxu1 %v3249_v63 }
 0x287   :  { %3041 = vmatpush3.bf16.msra.mxu0 %v3040_v37 }
 0x288   :  { %2879 = vmatmul.mubr.f32.vlgmr.msra.gmra.mrb[2].mxu1 %v2007_v36  ;;  %3042 = vmatprep.subr.bf16.mxu0 %v3249_v63 }
 0x289   :  { %3071 = vmatpush3.bf16.msra.mxu1 %v3070_v41  ;;  %2897 = vmatprep.mubr.msk.f32.mxu1 %vm3250_vm1, %v3251_v16 }
 0x28a   :  { %3072 = vmatprep.subr.bf16.mxu1 %v3249_v63 }
 0x28b   :  { %3044 = vmatpush3.bf16.msra.mxu0 %v3043_v25 }
 0x28d   :  { %3074 = vmatpush3.bf16.msra.mxu1 %v3073_v53 }
 0x28e   :  { %2841 = vmatmul.mubr.f32.vlgmr.msra.gmra.mrb[4].mxu0 %v2005_v34  ;;  %3075 = vmatprep.subr.bf16.mxu1 %v3249_v63 }
 0x291   :  { %3077 = vmatpush3.bf16.msra.mxu1 %v3076_v4 }
 0x292   :  { %3078 = vmatprep.subr.bf16.mxu1 %v3249_v63 }
 0x295   :  { %3080 = vmatpush3.bf16.msra.mxu1 %v3079_v5 }
 0x296   :  { %3081 = vmatprep.subr.bf16.mxu1 %v3249_v63 }
 0x298   :  { %2898 = vmatmul.mubr.f32.vlgmr.msra.gmra.mrb[2].mxu1 %v2005_v34 }
 0x299   :  { %3083 = vmatpush3.bf16.msra.mxu1 %v3611_v39  ;;  %2916 = vmatprep.mubr.msk.f32.mxu1 %vm3250_vm1, %v3251_v16  ;;  %v2492_v39 = vld [vmem:[%s3710_s8] ss:$0 sm:$0xff] }
 0x29a   :  { %3084 = vmatprep.subr.bf16.mxu1 %v3249_v63 }
 0x29d   :  { %3086 = vmatpush3.bf16.msra.mxu1 %v3635_v61 }
 0x29e   :  { %3087 = vmatprep.subr.bf16.mxu1 %v3249_v63 }
 0x2a1   :  { %3089 = vmatpush3.bf16.msra.mxu1 %v3640_v2 }
 0x2a2   :  { %3090 = vmatprep.subr.bf16.mxu1 %v3249_v63 }
 0x2a5   :  { %3092 = vmatpush3.bf16.msra.mxu1 %v3644_v3 }
 0x2a8   :  { %2917 = vmatmul.mubr.f32.vlgmr.msra.gmra.mrb[2].mxu1 %v2005_v34 }
 0x361   :  { %v2122_v50 = vpop.f32.mrb[4].mxu0 }
 0x362   :  { %v2842_v51 = vpop.f32.mrb[5].mxu0  ;;  %v3093_v16 = vadd.f32 %v2492_v39, %v2122_v50 }
 0x37b   :  { %v2465_v52 = vpop.f32.mrb[2].mxu1 }
 0x37c   :  { %v3094_v54 = vadd.f32 %v3093_v16, %v2465_v52  ;;  %v2918_v55 = vpop.f32.mrb[3].mxu1 }
 0x37e   :  { %2469 = vst [vmem:[#allocation8] sm:$0x3] %v3094_v54 }
 0x37f   :  { %3226 = shalt.err (!%p3223_p0)
}
 0x380   :  { %s3227_s12 = scalar_lea.hbm %s3711_s9, 32 }
 0x381   :  { %p3228_p1 = scmp.ne.s32.totalorder %s3711_s9, %s3227_s12  ;;  %p3231_p2 = scmp.lt.u32.totalorder %s3227_s12, %s3711_s9 }
 0x383   :  { %p3233_p3 = pnand %p3231_p2, %p3228_p1 }
 0x385   :  { %3236 = shalt.err (!%p3233_p3)
}
 0x386   :  { %2479 = dma.vmem_to_hbm [thread:$0]  %s2477_s24, 32, %s3711_s9, [#allocation4]  }
 0x387   :  { %3241 = dma.done.wait [#allocation4], 32  }
 0x388   :  { %3242 = vsyncadd [#allocation4], 4294967264 }
 0x389   :  { %2483 = vsyncpa [#allocation3], 1 }
 0x38a   :  { %2484 = vsyncpa [#allocation6], 1 }
 0x38b   :  { %2485 = vsyncpa [#allocation4], 1 }

</bundles_post_ra>
